<compile_context>
chip_gen: v7x
topology: tpu7x:2x2x1
jax: 0.10.0
libtpu: 0.0.40
codegen_flags: <defaults>
</compile_context>

<pallas_src>
import jax
import jax.numpy as jnp
from jax import lax
from jax.experimental import pallas as pl
from jax.experimental.pallas import tpu as pltpu

EPS = 1e-4


# --------------------------------------------------------------------------
# Kernels
# --------------------------------------------------------------------------
def stats_kernel(x_ref, sum_ref, sq_ref):
    """Accumulate per-channel sum / sum-of-squares; HW reduce on the MXU."""
    first_step = jnp.logical_and(pl.program_id(1) == 0, pl.program_id(2) == 0)

    @pl.when(first_step)
    def _():
        sum_ref[...] = jnp.zeros_like(sum_ref)
        sq_ref[...] = jnp.zeros_like(sq_ref)

    x = x_ref[0].astype(jnp.float32)                       # (c_t, hw_t)
    ones = jnp.ones((x.shape[-1], 1), jnp.float32)
    # Lane-axis (HW) reduction on the MXU (keeps VPU/XLU free for the DMA feed).
    sum_ref[...] += jnp.dot(x, ones, preferred_element_type=jnp.float32)
    sq_ref[...] += jnp.dot(x * x, ones, preferred_element_type=jnp.float32)


def normalize_kernel(x_ref, scale_ref, shift_ref, o_ref):
    """out = x * scale + shift  (scale/shift pre-folded; one FMA per element)."""
    cdt = scale_ref.dtype
    x = x_ref[...].astype(cdt)
    o_ref[...] = (x * scale_ref[...] + shift_ref[...]).astype(o_ref.dtype)


# --------------------------------------------------------------------------
# Hardware / tiling helpers
# --------------------------------------------------------------------------
def _vmem_capacity_bytes():
    try:
        return int(pltpu.get_tpu_info().vmem_capacity_bytes)
    except Exception:
        return 64 << 20  # conservative (v7x-sized) default


def _is_v5_device():
    try:
        return "v5" in jax.devices()[0].device_kind.lower()
    except Exception:
        return False


def _vmem_limit(need_bytes, cap_bytes):
    # Generation-aware cap: ~48 MiB on v7x (64 MiB phys), ~96 MiB on v5e/v6e.
    gen_cap = max(min(cap_bytes * 3 // 4, cap_bytes - (16 << 20)), 32 << 20)
    return int(min(max(need_bytes, 24 << 20), gen_cap))


def _pick_divisor(dim, candidates):
    for t in candidates:
        if t <= dim and dim % t == 0:
            return t
    return dim  # full dim is always a legal block size


def _pick_channel_tile(c, hw_t, itemsize, budget, candidates=(256, 128, 64, 32, 16, 8)):
    for cand in candidates:
        if cand <= c and c % cand == 0 and cand * hw_t * itemsize <= budget:
            return cand
    if c * hw_t * itemsize <= budget:
        return c
    for cand in (4, 2, 1):
        if c % cand == 0 and cand * hw_t * itemsize <= budget:
            return cand
    return 1


def _ensure_two_blocks(dim, tile, min_tile=8):
    # Megacore: prefer >= 2 blocks along a parallel axis so both TCs get work.
    while (dim // tile < 2 and tile % 2 == 0 and tile // 2 >= min_tile
           and dim % (tile // 2) == 0):
        tile //= 2
    return tile


# --------------------------------------------------------------------------
# Wrapper
# --------------------------------------------------------------------------
def biggan_conditional_batchnorm2d(x, y, w_gain, w_bias, eps=EPS):
    """x: (N, C, H, W) NCHW; y: (N, in_features);
    w_gain / w_bias: (out_features=C, in_features) (PyTorch nn.Linear layout)."""
    n, c, h, w = x.shape
    hw = h * w
    itemsize = jnp.dtype(x.dtype).itemsize
    x3 = x.reshape(n, c, hw)

    cap = _vmem_capacity_bytes()
    big_vmem = cap >= (96 << 20)          # v5e / v6e (128 MiB) vs v7x (64 MiB)
    # TODO(synk): for BigGAN stages with H*W < 128 the last dim is lane-sparse;
    # a lane-dense channel-into-lane repack is not implemented here.

    # ---------------- Pass 1: per-channel sum / sum-of-squares ----------------
    budget1 = (4 << 20) if big_vmem else (2 << 20)
    hw_t1 = _pick_divisor(hw, (2048, 1024, 512, 256, 128))
    c_t1 = _pick_channel_tile(c, hw_t1, itemsize, budget1,
                              candidates=(128, 64, 32, 16, 8))
    c_t1 = _ensure_two_blocks(c, c_t1)
    blk1 = c_t1 * hw_t1
    # double-buffered input block + f32 cast / x*x temporaries + headroom
    need1 = 2 * blk1 * itemsize + 2 * blk1 * 4 + (8 << 20)

    sums, sqs = pl.pallas_call(
        stats_kernel,
        out_shape=(
            jax.ShapeDtypeStruct((c, 1), jnp.float32),
            jax.ShapeDtypeStruct((c, 1), jnp.float32),
        ),
        grid_spec=pltpu.PrefetchScalarGridSpec(
            num_scalar_prefetch=0,
            grid=(c // c_t1, n, hw // hw_t1),
            in_specs=[pl.BlockSpec((1, c_t1, hw_t1), lambda ci, ni, hi: (ni, ci, hi))],
            out_specs=[
                pl.BlockSpec((c_t1, 1), lambda ci, ni, hi: (ci, 0)),
                pl.BlockSpec((c_t1, 1), lambda ci, ni, hi: (ci, 0)),
            ],
        ),
        compiler_params=pltpu.CompilerParams(
            dimension_semantics=("parallel", "arbitrary", "arbitrary"),
            vmem_limit_bytes=_vmem_limit(need1, cap),
        ),
    )(x3)

    # ------- Finalize stats; fold conditional gain/bias into scale/shift -------
    # TODO(synk): E[x^2]-E[x]^2 in f32 can lose precision for strongly
    # off-center activations; clamped at 0 (adequate for BN-scale tolerances).
    count = jnp.float32(n * hw)
    mean = sums[:, 0] / count                                      # (C,)
    var = jnp.maximum(sqs[:, 0] / count - mean * mean, 0.0)        # biased var
    inv_std = lax.rsqrt(var + jnp.float32(eps))                    # (C,)

    yf = y.astype(jnp.float32)
    gain = 1.0 + yf @ w_gain.T.astype(jnp.float32)                 # (N, C)
    bias = yf @ w_bias.T.astype(jnp.float32)                       # (N, C)
    scale = gain * inv_std[None, :]                                # (N, C)
    shift = bias - mean[None, :] * scale                           # (N, C)

    # bf16 FMA only where the VPU supports it natively (v6e / v7x), never v5e.
    use_bf16 = (x.dtype == jnp.bfloat16) and not _is_v5_device()
    cdt = jnp.bfloat16 if use_bf16 else jnp.float32
    scale3 = scale.astype(cdt)[:, :, None]                         # (N, C, 1)
    shift3 = shift.astype(cdt)[:, :, None]                         # (N, C, 1)

    # ---------------- Pass 2: out = x * scale + shift ----------------
    # Tiling decoupled from the stats pass; target 1-4 MiB (v7x) / up to 8 MiB
    # (v5e/v6e) lane-dense blocks for the HBM-bound FMA.
    budget2 = (8 << 20) if big_vmem else (4 << 20)
    hw_t2 = _pick_divisor(hw, (4096, 2048, 1024, 512, 256, 128))
    c_t2 = _pick_channel_tile(c, hw_t2, itemsize, budget2)
    if n < 2:
        c_t2 = _ensure_two_blocks(c, c_t2)
    c_blocks2 = c // c_t2
    blk2 = c_t2 * hw_t2
    # double-buffered in + out blocks + compute-dtype temp + headroom
    need2 = 4 * blk2 * itemsize + blk2 * 4 + (8 << 20)

    # Put the larger parallel axis first so megacore sharding sees >= 2 blocks.
    if n >= c_blocks2:
        grid2 = (n, c_blocks2, hw // hw_t2)
        x_map = lambda a, b, hi: (a, b, hi)
        s_map = lambda a, b, hi: (a, b, 0)
    else:
        grid2 = (c_blocks2, n, hw // hw_t2)
        x_map = lambda a, b, hi: (b, a, hi)
        s_map = lambda a, b, hi: (b, a, 0)

    out3 = pl.pallas_call(
        normalize_kernel,
        out_shape=jax.ShapeDtypeStruct((n, c, hw), x.dtype),
        grid_spec=pltpu.PrefetchScalarGridSpec(
            num_scalar_prefetch=0,
            grid=grid2,
            in_specs=[
                pl.BlockSpec((1, c_t2, hw_t2), x_map),
                pl.BlockSpec((1, c_t2, 1), s_map),
                pl.BlockSpec((1, c_t2, 1), s_map),
            ],
            out_specs=pl.BlockSpec((1, c_t2, hw_t2), x_map),
        ),
        compiler_params=pltpu.CompilerParams(
            dimension_semantics=("parallel", "parallel", "parallel"),
            vmem_limit_bytes=_vmem_limit(need2, cap),
        ),
    )(x3, scale3, shift3)

    return out3.reshape(n, c, h, w)


# --------------------------------------------------------------------------
# Pure-JAX reference of the PyTorch forward (training-mode BN)
# --------------------------------------------------------------------------
def reference(x, y, w_gain, w_bias):
    mean = jnp.mean(x, axis=(0, 2, 3), keepdims=True)
    var = jnp.mean((x - mean) ** 2, axis=(0, 2, 3), keepdims=True)  # biased
    x_hat = (x - mean) / jnp.sqrt(var + EPS)
    gain = 1.0 + (y @ w_gain.T)[:, :, None, None]
    bias = (y @ w_bias.T)[:, :, None, None]
    return x_hat * gain + bias


if __name__ == "__main__":
    N, C, H, W = 2, 4, 16, 16      # batch, out_features (channels), spatial
    F = 8                          # in_features (conditioning dim)

    key = jax.random.PRNGKey(0)
    kx, ky, kg, kb = jax.random.split(key, 4)
    x = jax.random.normal(kx, (N, C, H, W), dtype=jnp.float32)
    y = jax.random.normal(ky, (N, F), dtype=jnp.float32)
    # Deterministic synthetic weights for the two bias-free Linear layers.
    w_gain = 0.1 * jax.random.normal(kg, (C, F), dtype=jnp.float32)
    w_bias = 0.1 * jax.random.normal(kb, (C, F), dtype=jnp.float32)

    out = jax.jit(biggan_conditional_batchnorm2d)(x, y, w_gain, w_bias)
    jax.block_until_ready(out)

    ref = reference(x, y, w_gain, w_bias)
    assert out.shape == (N, C, H, W)
    assert jnp.allclose(out, ref, atol=1e-4, rtol=1e-4), "mismatch vs reference"
    print("KERNEL_OK")
</pallas_src>

<mosaic_0001>
module attributes {stable_mosaic.version = 11 : i64} {
  func.func @stats_kernel(%arg0: i32, %arg1: i32, %arg2: i32, %arg3: memref<1x4x256xf32, #tpu.memory_space<vmem>>, %arg4: memref<4x1xf32, #tpu.memory_space<vmem>>, %arg5: memref<4x1xf32, #tpu.memory_space<vmem>>) attributes {dimension_semantics = [#tpu.dimension_semantics<parallel>, #tpu.dimension_semantics<arbitrary>, #tpu.dimension_semantics<arbitrary>], iteration_bounds = array<i64: 1, 2, 1>, scalar_prefetch = 0 : i64, scratch_operands = 0 : i64, tpu.core_type = #tpu.core_type<tc>, window_params = [{transform_indices = @transform_0, window_bounds = array<i64: 1, 4, 256>}, {transform_indices = @transform_1, window_bounds = array<i64: 4, 1>}, {transform_indices = @transform_2, window_bounds = array<i64: 4, 1>}]} {
    %c0_i32 = arith.constant 0 : i32
    %0 = arith.cmpi eq, %arg1, %c0_i32 : i32
    %c0_i32_0 = arith.constant 0 : i32
    %1 = arith.cmpi eq, %arg2, %c0_i32_0 : i32
    %2 = arith.andi %0, %1 : i1
    %3 = arith.extui %2 : i1 to i32
    %c0_i32_1 = arith.constant 0 : i32
    %4 = arith.cmpi ne, %3, %c0_i32_1 : i32
    scf.if %4 {
      %cst_14 = arith.constant 0.000000e+00 : f32
      %17 = vector.broadcast %cst_14 : f32 to vector<4x1xf32>
      %c0_15 = arith.constant 0 : index
      %c0_16 = arith.constant 0 : index
      %18 = vector.load %arg4[%c0_15, %c0_16] : memref<4x1xf32, #tpu.memory_space<vmem>>, vector<4x1xf32>
      tpu.vector_store %arg4[%c0_15, %c0_16], %17 {strides = array<i32>} : memref<4x1xf32, #tpu.memory_space<vmem>>, vector<4x1xf32>,
      %cst_17 = arith.constant 0.000000e+00 : f32
      %19 = vector.broadcast %cst_17 : f32 to vector<4x1xf32>
      %c0_18 = arith.constant 0 : index
      %c0_19 = arith.constant 0 : index
      %20 = vector.load %arg5[%c0_18, %c0_19] : memref<4x1xf32, #tpu.memory_space<vmem>>, vector<4x1xf32>
      tpu.vector_store %arg5[%c0_18, %c0_19], %19 {strides = array<i32>} : memref<4x1xf32, #tpu.memory_space<vmem>>, vector<4x1xf32>,
    } else {
    }
    %c0 = arith.constant 0 : index
    %c0_2 = arith.constant 0 : index
    %c0_3 = arith.constant 0 : index
    %5 = vector.load %arg3[%c0, %c0_2, %c0_3] : memref<1x4x256xf32, #tpu.memory_space<vmem>>, vector<1x4x256xf32>
    %6 = vector.shape_cast %5 : vector<1x4x256xf32> to vector<4x256xf32>
    %cst = arith.constant 1.000000e+00 : f32
    %7 = vector.broadcast %cst : f32 to vector<256x1xf32>
    %c0_4 = arith.constant 0 : index
    %c0_5 = arith.constant 0 : index
    %8 = vector.load %arg4[%c0_4, %c0_5] : memref<4x1xf32, #tpu.memory_space<vmem>>, vector<4x1xf32>
    %cst_6 = arith.constant dense<0.000000e+00> : vector<4x1xf32>
    %9 = tpu.matmul %6, %7, %cst_6 {dimension_numbers = #tpu.dot_dimension_numbers<[1], [0], [0], [1], [0, 0, 1, 1], [], []>} : vector<4x256xf32>, vector<256x1xf32>, vector<4x1xf32> -> vector<4x1xf32>
    %10 = arith.addf %8, %9 : vector<4x1xf32>
    %c0_7 = arith.constant 0 : index
    %c0_8 = arith.constant 0 : index
    %11 = vector.load %arg4[%c0_7, %c0_8] : memref<4x1xf32, #tpu.memory_space<vmem>>, vector<4x1xf32>
    tpu.vector_store %arg4[%c0_7, %c0_8], %10 {strides = array<i32>} : memref<4x1xf32, #tpu.memory_space<vmem>>, vector<4x1xf32>,
    %c0_9 = arith.constant 0 : index
    %c0_10 = arith.constant 0 : index
    %12 = vector.load %arg5[%c0_9, %c0_10] : memref<4x1xf32, #tpu.memory_space<vmem>>, vector<4x1xf32>
    %13 = arith.mulf %6, %6 : vector<4x256xf32>
    %cst_11 = arith.constant dense<0.000000e+00> : vector<4x1xf32>
    %14 = tpu.matmul %13, %7, %cst_11 {dimension_numbers = #tpu.dot_dimension_numbers<[1], [0], [0], [1], [0, 0, 1, 1], [], []>} : vector<4x256xf32>, vector<256x1xf32>, vector<4x1xf32> -> vector<4x1xf32>
    %15 = arith.addf %12, %14 : vector<4x1xf32>
    %c0_12 = arith.constant 0 : index
    %c0_13 = arith.constant 0 : index
    %16 = vector.load %arg5[%c0_12, %c0_13] : memref<4x1xf32, #tpu.memory_space<vmem>>, vector<4x1xf32>
    tpu.vector_store %arg5[%c0_12, %c0_13], %15 {strides = array<i32>} : memref<4x1xf32, #tpu.memory_space<vmem>>, vector<4x1xf32>,
    return
  }
  func.func @transform_0(%arg0: i32, %arg1: i32, %arg2: i32) -> (i32, i32, i32) {
    %c0_i32 = arith.constant 0 : i32
    return %arg1, %arg0, %arg2 : i32, i32, i32
  }
  func.func @transform_1(%arg0: i32, %arg1: i32, %arg2: i32) -> (i32, i32) {
    %c0_i32 = arith.constant 0 : i32
    %c0_i32_0 = arith.constant 0 : i32
    return %arg0, %c0_i32 : i32, i32
  }
  func.func @transform_2(%arg0: i32, %arg1: i32, %arg2: i32) -> (i32, i32) {
    %c0_i32 = arith.constant 0 : i32
    %c0_i32_0 = arith.constant 0 : i32
    return %arg0, %c0_i32 : i32, i32
  }
}

module attributes {stable_mosaic.version = 11 : i64} {
  func.func @normalize_kernel(%arg0: i32, %arg1: i32, %arg2: i32, %arg3: memref<1x4x256xf32, #tpu.memory_space<vmem>>, %arg4: memref<1x4x1xf32, #tpu.memory_space<vmem>>, %arg5: memref<1x4x1xf32, #tpu.memory_space<vmem>>, %arg6: memref<1x4x256xf32, #tpu.memory_space<vmem>>) attributes {dimension_semantics = [#tpu.dimension_semantics<parallel>, #tpu.dimension_semantics<parallel>, #tpu.dimension_semantics<parallel>], iteration_bounds = array<i64: 2, 1, 1>, scalar_prefetch = 0 : i64, scratch_operands = 0 : i64, tpu.core_type = #tpu.core_type<tc>, window_params = [{transform_indices = @transform_0, window_bounds = array<i64: 1, 4, 256>}, {transform_indices = @transform_1, window_bounds = array<i64: 1, 4, 1>}, {transform_indices = @transform_2, window_bounds = array<i64: 1, 4, 1>}, {transform_indices = @transform_3, window_bounds = array<i64: 1, 4, 256>}]} {
    %c0 = arith.constant 0 : index
    %c0_0 = arith.constant 0 : index
    %c0_1 = arith.constant 0 : index
    %0 = vector.load %arg3[%c0, %c0_0, %c0_1] : memref<1x4x256xf32, #tpu.memory_space<vmem>>, vector<1x4x256xf32>
    %c0_2 = arith.constant 0 : index
    %c0_3 = arith.constant 0 : index
    %c0_4 = arith.constant 0 : index
    %1 = vector.load %arg4[%c0_2, %c0_3, %c0_4] : memref<1x4x1xf32, #tpu.memory_space<vmem>>, vector<1x4x1xf32>
    %2 = vector.broadcast %1 : vector<1x4x1xf32> to vector<1x4x256xf32>
    %3 = arith.mulf %0, %2 : vector<1x4x256xf32>
    %c0_5 = arith.constant 0 : index
    %c0_6 = arith.constant 0 : index
    %c0_7 = arith.constant 0 : index
    %4 = vector.load %arg5[%c0_5, %c0_6, %c0_7] : memref<1x4x1xf32, #tpu.memory_space<vmem>>, vector<1x4x1xf32>
    %5 = vector.broadcast %4 : vector<1x4x1xf32> to vector<1x4x256xf32>
    %6 = arith.addf %3, %5 : vector<1x4x256xf32>
    %c0_8 = arith.constant 0 : index
    %c0_9 = arith.constant 0 : index
    %c0_10 = arith.constant 0 : index
    %7 = vector.load %arg6[%c0_8, %c0_9, %c0_10] : memref<1x4x256xf32, #tpu.memory_space<vmem>>, vector<1x4x256xf32>
    tpu.vector_store %arg6[%c0_8, %c0_9, %c0_10], %6 {strides = array<i32>} : memref<1x4x256xf32, #tpu.memory_space<vmem>>, vector<1x4x256xf32>,
    return
  }
  func.func @transform_0(%arg0: i32, %arg1: i32, %arg2: i32) -> (i32, i32, i32) {
    %c0_i32 = arith.constant 0 : i32
    return %arg0, %arg1, %arg2 : i32, i32, i32
  }
  func.func @transform_1(%arg0: i32, %arg1: i32, %arg2: i32) -> (i32, i32, i32) {
    %c0_i32 = arith.constant 0 : i32
    %c0_i32_0 = arith.constant 0 : i32
    return %arg0, %arg1, %c0_i32 : i32, i32, i32
  }
  func.func @transform_2(%arg0: i32, %arg1: i32, %arg2: i32) -> (i32, i32, i32) {
    %c0_i32 = arith.constant 0 : i32
    %c0_i32_0 = arith.constant 0 : i32
    return %arg0, %arg1, %c0_i32 : i32, i32, i32
  }
  func.func @transform_3(%arg0: i32, %arg1: i32, %arg2: i32) -> (i32, i32, i32) {
    %c0_i32 = arith.constant 0 : i32
    return %arg0, %arg1, %arg2 : i32, i32, i32
  }
}

</mosaic_0001>

<bundles_post_ra>
// kernel: biggan_conditional_batchnorm2d.2
= control target key start
LH: loop header
LB: loop body
LE: loop exit
PB: predicated region body
PF: predicated region fallthrough
CT: control target
= control target key end

     0   :  { %s651_s9 = smov 0   ;;  %s653_s10 = smov 0   ;;  %s699_s0 = inlined_call_operand.vmem [shape: f32[2,4,256], index: 0, kind: input, shape index: {}]   ;;  %s700_s1 = inlined_call_operand.vmem [shape: f32[4,1], index: 1, kind: output, shape index: {0}]   ;;  %s701_s2 = inlined_call_operand.vmem [shape: f32[4,1], index: 2, kind: output, shape index: {1}]  }
   0x1   :  { %s655_s11 = smov 0  }
   0x2 LB: > { %s28_s12 = sadd.s32 1, %s628_s10  ;;  %p471_p0 = scmp.ge.s32.totalorder %s632_s11, 1  ;;  %s632_s11 = sphi %s655_s11, %s13_s11   ;;  %s628_s10 = sphi %s653_s10, %s703_s10   ;;  %s624_s9 = sphi %s651_s9, %s702_s9  }
   0x3   : > { %p30_p1 = scmp.ge.s32.totalorder %s28_s12, 2  ;;  %p147_p2 = scmp.lt.s32.totalorder %s632_s11, 3 }
   0x5   : > { %s705_s12 = smov (%p30_p1, %s28_s12), 0  ;;  %p148_p3 = pnand %p471_p0, %p147_p2 }
   0x6   : > { %p181_p4 = scmp.lt.s32.totalorder (!%p148_p3), %s624_s9, 1  ;;  %p202_p5 = scmp.eq.s32.totalorder (!%p148_p3), %s624_s9, 0 }
   0x7   : > { %151 = sbr.rel (%p148_p3) target bundleno = 272 (0x110), region = 24 }
   0xe   : > { %s707_s9 = smov (!%p181_p4, %s624_s9), 1  ;;  %207 = sbr.rel (!%p202_p5) target bundleno = 21 (0x15), region = 28 }
   0xf   : > { %s479_s13 = sshll.u32 %s707_s9, 3  ;;  %vm208_vm0 = vcmask (%p202_p5), 3072   ;;  %v634_v0 = vmov (%p202_p5), 0.0  }
  0x10   : > { %s192_s16 = scalar_lea.vmem %s699_s0, %s479_s13  ;;  %209 = vst.msk [vmem:[%s700_s1] sm:$0xf] (%p202_p5), %vm208_vm0, %v634_v0  ;;  %210 = vst.msk [vmem:[%s701_s2] sm:$0xf] (%p202_p5), %vm208_vm0, %v634_v0 }
  0x15 PF: > { %v211_v1 = vld [vmem:[%s192_s16] sm:$0xff]  ;;  %v635_v2 = vmov 1.0|1.0   ;;  %vm287_vm1 = vcmask 3072  }
  0x16   : > { %551 = vmatprep.subr.bf16.mxu0 %v635_v2  ;;  %567 = vmatprep.subr.bf16.mxu1 %v635_v2  ;;  %v214_v3 = vcombine.high %v211_v1, %v211_v1  ;;  %v290_v4 = vmul.f32 %v211_v1, %v211_v1 }
  0x17   : > { %552 = vmatpush3.bf16.msra.mxu0 %v635_v2  ;;  %568 = vmatpush3.bf16.msra.mxu1 %v635_v2  ;;  %v212_v8 = vld [vmem:[%s700_s1] sm:$0xf] }
  0x18   : > { %553 = vmatprep.subr.bf16.mxu0 %v635_v2  ;;  %569 = vmatprep.subr.bf16.mxu1 %v635_v2  ;;  %v292_v5 = vcombine.high %v290_v4, %v290_v4  ;;  %v289_v10 = vld [vmem:[%s701_s2] sm:$0xf] }
  0x19   : > { %280 = vmatprep.mubr.f32.mxu0 %v214_v3 }
  0x1a   : > { %358 = vmatprep.mubr.f32.mxu1 %v292_v5 }
  0x1b   : > { %554 = vmatpush3.bf16.msra.mxu0 %v635_v2  ;;  %570 = vmatpush3.bf16.msra.mxu1 %v635_v2 }
  0x1c   : > { %555 = vmatprep.subr.bf16.mxu0 %v635_v2  ;;  %571 = vmatprep.subr.bf16.mxu1 %v635_v2 }
  0x1f   : > { %556 = vmatpush3.bf16.msra.mxu0 %v635_v2  ;;  %572 = vmatpush3.bf16.msra.mxu1 %v635_v2 }
  0x20   : > { %557 = vmatprep.subr.bf16.mxu0 %v635_v2  ;;  %573 = vmatprep.subr.bf16.mxu1 %v635_v2 }
  0x23   : > { %558 = vmatpush3.bf16.msra.mxu0 %v635_v2  ;;  %574 = vmatpush3.bf16.msra.mxu1 %v635_v2 }
  0x24   : > { %559 = vmatprep.subr.bf16.mxu0 %v635_v2  ;;  %575 = vmatprep.subr.bf16.mxu1 %v635_v2 }
  0x27   : > { %560 = vmatpush3.bf16.msra.mxu0 %v635_v2  ;;  %576 = vmatpush3.bf16.msra.mxu1 %v635_v2 }
  0x28   : > { %561 = vmatprep.subr.bf16.mxu0 %v635_v2  ;;  %577 = vmatprep.subr.bf16.mxu1 %v635_v2 }
  0x2b   : > { %562 = vmatpush3.bf16.msra.mxu0 %v635_v2  ;;  %578 = vmatpush3.bf16.msra.mxu1 %v635_v2 }
  0x2c   : > { %563 = vmatprep.subr.bf16.mxu0 %v635_v2  ;;  %579 = vmatprep.subr.bf16.mxu1 %v635_v2 }
  0x2f   : > { %564 = vmatpush3.bf16.msra.mxu0 %v635_v2  ;;  %580 = vmatpush3.bf16.msra.mxu1 %v635_v2 }
  0x30   : > { %565 = vmatprep.subr.bf16.mxu0 %v635_v2  ;;  %581 = vmatprep.subr.bf16.mxu1 %v635_v2 }
  0x33   : > { %566 = vmatpush3.bf16.msra.mxu0 %v635_v2  ;;  %582 = vmatpush3.bf16.msra.mxu1 %v635_v2 }
  0x36   : > { %281 = vmatmul.mubr.f32.vlgmr.msra.gmra.mrb[0].mxu0 %v211_v1  ;;  %359 = vmatmul.mubr.f32.vlgmr.msra.gmra.mrb[0].mxu1 %v290_v4 }
 0x109   : > { %v513_v6 = vpop.f32.mrb[0].mxu0  ;;  %v548_v7 = vpop.f32.mrb[0].mxu1 }
 0x10a   : > { %v514_v9 = vpop.f32.mrb[1].mxu0  ;;  %v549_v11 = vpop.f32.mrb[1].mxu1 }
 0x10b   : > { %v515_v12 = vadd.f32 %v514_v9, %v513_v6  ;;  %v550_v13 = vadd.f32 %v549_v11, %v548_v7 }
 0x10d   : > { %v286_v14 = vadd.f32 %v515_v12, %v212_v8  ;;  %v364_v15 = vadd.f32 %v550_v13, %v289_v10 }
 0x10f   : > { %288 = vst.msk [vmem:[%s700_s1] sm:$0xf] %vm287_vm1, %v286_v14  ;;  %365 = vst.msk [vmem:[%s701_s2] sm:$0xf] %vm287_vm1, %v364_v15 }
 0x110 PF: > { %s13_s11 = sadd.s32 1, %s632_s11   ;;  %s702_s9 = smov %s628_s10 }
 0x111   : > { %p10_p6 = scmp.ge.s32.totalorder %s13_s11, 4   ;;  %s703_s10 = smov %s705_s12 }
 0x113   :  { %12 = sbr.rel (!%p10_p6) target bundleno = 2 (0x2), region = 70 }

// kernel: biggan_conditional_batchnorm2d.3
= control target key start
LH: loop header
LB: loop body
LE: loop exit
PB: predicated region body
PF: predicated region fallthrough
CT: control target
= control target key end

     0   :  { %s557_s12 = smov 0   ;;  %s559_s13 = smov 0   ;;  %s596_s0 = inlined_call_operand.vmem [shape: f32[2,4,256], index: 0, kind: input, shape index: {}]   ;;  %s597_s1 = inlined_call_operand.vmem [shape: f32[2,4,1], index: 1, kind: input, shape index: {}]   ;;  %s598_s2 = inlined_call_operand.vmem [shape: f32[2,4,1], index: 2, kind: input, shape index: {}]   ;;  %s599_s3 = inlined_call_operand.vmem [shape: f32[2,4,256], index: 3, kind: output, shape index: {}]  }
   0x1   :  { %s561_s14 = smov 0  }
   0x2 LB: > { %s32_s15 = sadd.s32 1, %s529_s13  ;;  %p473_p0 = scmp.ge.s32.totalorder %s533_s14, 1  ;;  %s533_s14 = sphi %s561_s14, %s13_s14   ;;  %s529_s13 = sphi %s559_s13, %s601_s13   ;;  %s525_s12 = sphi %s557_s12, %s600_s12  }
   0x3   : > { %p34_p1 = scmp.ge.s32.totalorder %s32_s15, 2  ;;  %p201_p2 = scmp.lt.s32.totalorder %s533_s14, 3 }
   0x5   : > { %s603_s15 = smov (%p34_p1, %s32_s15), 0  ;;  %p202_p3 = pnand %p473_p0, %p201_p2 }
   0x6   : > { %p256_p4 = scmp.lt.s32.totalorder (!%p202_p3), %s525_s12, 1  ;;  %v535_v0 = vmov (!%p202_p3), 0   ;;  %v536_v3 = vmov (!%p202_p3), 839922192   ;;  %v306_v5 = vlaneseq (!%p202_p3) }
   0x7   : > { %205 = sbr.rel (%p202_p3) target bundleno = 155 (0x9b), region = 32  ;;  %510 = vset.pattern.permute.xlu0 (!%p202_p3), %v535_v0  ;;  %v304_v4 = vunpack.c.l.s4 (!%p202_p3), %v536_v3 }
   0x8   : > { %v307_v7 = vshrl.u32 (!%p202_p3), %v306_v5, 7 }
   0x9   : > { %v305_v6 = vunpack.c.0.s8 (!%p202_p3), %v304_v4 }
   0xb   : > { %v308_v8 = vsub.s32 (!%p202_p3), %v305_v6, %v307_v7 }
   0xe   : > { %s605_s12 = smov (!%p256_p4, %s525_s12), 1 }
   0xf   : > { %s476_s16 = sshll.u32 %s605_s12, 2  ;;  %s482_s23 = sshll.u32 %s605_s12, 3 }
  0x10   : > { %s275_s19 = scalar_lea.vmem %s597_s1, %s476_s16  ;;  %s282_s22 = scalar_lea.vmem %s598_s2, %s476_s16 }
  0x11   : > { %v298_v1 = vld [vmem:[%s275_s19] sm:$0xf]  ;;  %s267_s26 = scalar_lea.vmem %s596_s0, %s482_s23  ;;  %s295_s29 = scalar_lea.vmem %s599_s3, %s482_s23 }
  0x12   : > { %301 = vperm.xlu0 %510, %v298_v1   ;;  %v312_v2 = vld [vmem:[%s282_s22] sm:$0xf] }
  0x13   : > { %v297_v11 = vld [vmem:[%s267_s26] sm:$0xff] }
  0x16   : > { %315 = vperm.xlu0 %510, %v312_v2  }
  0x91   : > { %v302_v9 = vpop.permute.xlu0 %301 }
  0x92   : > { %v309_v10 = vrot.slane %v302_v9, %v308_v8 }
  0x94   : > { %v311_v13 = vmul.f32 %v309_v10, %v297_v11 }
  0x95   : > { %v316_v12 = vpop.permute.xlu0 %315 }
  0x96   : > { %v323_v14 = vrot.slane %v316_v12, %v308_v8 }
  0x98   : > { %v325_v15 = vadd.f32 %v323_v14, %v311_v13 }
  0x9a   : > { %326 = vst [vmem:[%s295_s29] sm:$0xff] %v325_v15 }
  0x9b PF: > { %s13_s14 = sadd.s32 1, %s533_s14   ;;  %s600_s12 = smov %s529_s13 }
  0x9c   : > { %p10_p5 = scmp.ge.s32.totalorder %s13_s14, 4   ;;  %s601_s13 = smov %s603_s15 }
  0x9e   :  { %12 = sbr.rel (!%p10_p5) target bundleno = 2 (0x2), region = 68 }

</bundles_post_ra>
